<compile_context>
chip_gen: v6e
topology: v6e:2x2x1
jax: 0.10.0
libtpu: 0.0.40
codegen_flags: <defaults>
</compile_context>

<pallas_src>
import functools
import math

import jax
import jax.numpy as jnp
from jax import lax
from jax.experimental import pallas as pl
from jax.experimental.pallas import tpu as pltpu


def _round_up(x, m):
    return (x + m - 1) // m * m


def _choose_tk(dp, tk_max):
    """Largest multiple of 128 that divides dp and is <= tk_max (dp if it fits)."""
    if dp <= tk_max:
        return dp
    best = 128
    t = 128
    while t <= tk_max:
        if dp % t == 0:
            best = t
        t += 128
    return best


def _maybe_vmem_limit(block_bytes):
    """Return an explicit vmem_limit_bytes only when the default would be tight."""
    est = 2 * int(block_bytes) + (2 << 20)          # x2: double-buffered inputs
    if est <= 12 * 2**20:
        return None                                 # defaults are plenty
    return int(min(64 * 2**20, est))                # stay under v7x physical VMEM


# --------------------------------------------------------------------------
# Fused kernels
# --------------------------------------------------------------------------
def _classblock_kernel_single(x_ref, w1_ref, g1_ref, b1_ref, g2_ref, b2_ref,
                              w2_ref, cls_ref, *, eps, negative_slope):
    """Whole block in one straight-line pass (entire input_dim resident)."""
    # ---- BN1: train-mode batch stats, centered (two-pass) biased variance --
    x = x_ref[...]                                           # (N, Dp) f32
    mean = jnp.mean(x, axis=0, keepdims=True)
    xc = x - mean
    var = jnp.mean(xc * xc, axis=0, keepdims=True)           # >= 0 by construction
    scale = g1_ref[...] * lax.rsqrt(var + eps)               # gamma=0 in pad cols
    y = xc * scale + b1_ref[...]
    y = jnp.maximum(y, negative_slope * y)                   # LeakyReLU(0.1)

    # ---- Linear1: bf16 operands, f32 MXU accumulation ----------------------
    h = jnp.dot(y.astype(jnp.bfloat16), w1_ref[...],
                preferred_element_type=jnp.float32)          # (N, Bp) f32

    # ---- BN2 + classifier on the resident hidden tensor --------------------
    m2 = jnp.mean(h, axis=0, keepdims=True)
    hc = h - m2
    v2 = jnp.mean(hc * hc, axis=0, keepdims=True)
    s2 = g2_ref[...] * lax.rsqrt(v2 + eps)
    feat = hc * s2 + b2_ref[...]
    cls_ref[...] = jnp.dot(feat.astype(jnp.bfloat16), w2_ref[...],
                           preferred_element_type=jnp.float32
                           ).astype(cls_ref.dtype)


def _classblock_kernel_multi(x_ref, w1_ref, g1_ref, b1_ref, g2_ref, b2_ref,
                             w2_ref, cls_ref, acc_ref, *, eps, negative_slope, tk):
    """K-tiled fallback for input_dim too large for a single VMEM tile."""
    k = pl.program_id(0)
    off = pl.multiple_of(k * tk, 128)

    # BN1 stats are per-column over the full batch -> exact per K tile.
    x = x_ref[...]                                           # (N, tk) f32
    mean = jnp.mean(x, axis=0, keepdims=True)
    xc = x - mean
    var = jnp.mean(xc * xc, axis=0, keepdims=True)
    g1 = g1_ref[:, pl.ds(off, tk)]                           # resident (1, Dp)
    b1 = b1_ref[:, pl.ds(off, tk)]
    y = xc * (g1 * lax.rsqrt(var + eps)) + b1
    y = jnp.maximum(y, negative_slope * y)

    part = jnp.dot(y.astype(jnp.bfloat16), w1_ref[...],
                   preferred_element_type=jnp.float32)       # (N, Bp)

    @pl.when(k == 0)
    def _():
        acc_ref[...] = part                                  # write-first, no zero fill

    @pl.when(k > 0)
    def _():
        acc_ref[...] += part

    @pl.when(k == pl.num_programs(0) - 1)
    def _():
        h = acc_ref[...]
        m2 = jnp.mean(h, axis=0, keepdims=True)
        hc = h - m2
        v2 = jnp.mean(hc * hc, axis=0, keepdims=True)
        s2 = g2_ref[...] * lax.rsqrt(v2 + eps)
        feat = hc * s2 + b2_ref[...]
        cls_ref[...] = jnp.dot(feat.astype(jnp.bfloat16), w2_ref[...],
                               preferred_element_type=jnp.float32
                               ).astype(cls_ref.dtype)


# --------------------------------------------------------------------------
# Forward wrapper (expects pre-padded params from `prepare_params`)
# --------------------------------------------------------------------------
def classblock_forward(prep, x, *, class_num, eps=1e-5, negative_slope=0.1,
                       tk_max=2048):
    """x: (N, input_dim) f32 -> class scores (N, class_num) f32."""
    N, D = x.shape
    w1p, w2p = prep['w1'], prep['w2']            # (Dp,Bp) bf16, (Bp,Cp) bf16
    g1p, b1p = prep['bn1_g'], prep['bn1_b']      # (1, Dp) f32
    g2p, b2p = prep['bn2_g'], prep['bn2_b']      # (1, Bp) f32
    Dp, Bp = w1p.shape
    Cp = w2p.shape[1]
    assert Dp >= D and Dp == _round_up(D, 128)

    xp = jnp.pad(x, ((0, 0), (0, Dp - D))) if Dp != D else x
    itemsz = lambda a: int(a.size) * a.dtype.itemsize
    tk = _choose_tk(Dp, tk_max)

    if tk == Dp:
        # ---------------- single-step, straight-line kernel ----------------
        block_bytes = (itemsz(xp) + itemsz(w1p) + itemsz(w2p)
                       + itemsz(g1p) + itemsz(b1p) + itemsz(g2p) + itemsz(b2p)
                       + N * Bp * 4 + N * Cp * 4)
        kernel = functools.partial(_classblock_kernel_single, eps=eps,
                                   negative_slope=negative_slope)
        out = pl.pallas_call(
            kernel,
            out_shape=jax.ShapeDtypeStruct((N, Cp), jnp.float32),
            grid_spec=pltpu.PrefetchScalarGridSpec(
                num_scalar_prefetch=0,
                grid=(1,),
                in_specs=[
                    pl.BlockSpec((N, Dp), lambda k: (0, 0)),   # x
                    pl.BlockSpec((Dp, Bp), lambda k: (0, 0)),  # W1 (bf16)
                    pl.BlockSpec((1, Dp), lambda k: (0, 0)),   # bn1 gamma
                    pl.BlockSpec((1, Dp), lambda k: (0, 0)),   # bn1 beta
                    pl.BlockSpec((1, Bp), lambda k: (0, 0)),   # bn2 gamma
                    pl.BlockSpec((1, Bp), lambda k: (0, 0)),   # bn2 beta
                    pl.BlockSpec((Bp, Cp), lambda k: (0, 0)),  # W2 (bf16)
                ],
                out_specs=pl.BlockSpec((N, Cp), lambda k: (0, 0)),
            ),
            compiler_params=pltpu.CompilerParams(
                dimension_semantics=("arbitrary",),
                vmem_limit_bytes=_maybe_vmem_limit(block_bytes)),
        )(xp, w1p, g1p, b1p, g2p, b2p, w2p)
    else:
        # ------------------- K-tiled reduction fallback ---------------------
        block_bytes = (N * tk * 4 + tk * Bp * 2 + itemsz(w2p)
                       + itemsz(g1p) + itemsz(b1p) + itemsz(g2p) + itemsz(b2p)
                       + N * Bp * 4 + N * Cp * 4)
        kernel = functools.partial(_classblock_kernel_multi, eps=eps,
                                   negative_slope=negative_slope, tk=tk)
        out = pl.pallas_call(
            kernel,
            out_shape=jax.ShapeDtypeStruct((N, Cp), jnp.float32),
            grid_spec=pltpu.PrefetchScalarGridSpec(
                num_scalar_prefetch=0,
                grid=(Dp // tk,),
                in_specs=[
                    pl.BlockSpec((N, tk), lambda k: (0, k)),   # x tile
                    pl.BlockSpec((tk, Bp), lambda k: (k, 0)),  # W1 tile (bf16)
                    pl.BlockSpec((1, Dp), lambda k: (0, 0)),   # bn1 gamma (resident)
                    pl.BlockSpec((1, Dp), lambda k: (0, 0)),   # bn1 beta  (resident)
                    pl.BlockSpec((1, Bp), lambda k: (0, 0)),   # bn2 gamma
                    pl.BlockSpec((1, Bp), lambda k: (0, 0)),   # bn2 beta
                    pl.BlockSpec((Bp, Cp), lambda k: (0, 0)),  # W2 (bf16)
                ],
                out_specs=pl.BlockSpec((N, Cp), lambda k: (0, 0)),
                scratch_shapes=[pltpu.VMEM((N, Bp), jnp.float32)],
            ),
            compiler_params=pltpu.CompilerParams(
                dimension_semantics=("arbitrary",),
                vmem_limit_bytes=_maybe_vmem_limit(block_bytes)),
        )(xp, w1p, g1p, b1p, g2p, b2p, w2p)

    return out[:, :class_num]


# --------------------------------------------------------------------------
# Parameters
# --------------------------------------------------------------------------
def build_params(key, input_dim, class_num, num_bottleneck=512):
    """Raw (unpadded) parameters, matching the PyTorch init scheme."""
    k1, k2, k3, k4 = jax.random.split(key, 4)
    # BatchNorm1d (weights_init_kaiming1): weight ~ N(1, 0.02), bias = 0
    bn1_g = 1.0 + 0.02 * jax.random.normal(k1, (input_dim,), jnp.float32)
    bn1_b = jnp.zeros((input_dim,), jnp.float32)
    bn2_g = 1.0 + 0.02 * jax.random.normal(k3, (num_bottleneck,), jnp.float32)
    bn2_b = jnp.zeros((num_bottleneck,), jnp.float32)
    # Linear(input_dim -> num_bottleneck, bias=False): kaiming, fan_out
    std1 = math.sqrt(2.0 / num_bottleneck)
    w1 = std1 * jax.random.normal(k2, (input_dim, num_bottleneck), jnp.float32)
    # classifier Linear(num_bottleneck -> class_num, bias=False): N(0, 0.001)
    w2 = 0.001 * jax.random.normal(k4, (num_bottleneck, class_num), jnp.float32)
    return {
        'bn1_g': bn1_g, 'bn1_b': bn1_b,
        'bn2_g': bn2_g, 'bn2_b': bn2_b,
        'w1': w1.astype(jnp.bfloat16),   # pre-cast once (MXU feed, f32 acc)
        'w2': w2.astype(jnp.bfloat16),
    }


def prepare_params(raw):
    """One-time lane-dense padding + reshaping (hoisted out of the forward)."""
    D, B = raw['w1'].shape
    C = raw['w2'].shape[1]
    Dp, Bp, Cp = _round_up(D, 128), _round_up(B, 128), _round_up(C, 128)
    return {
        'w1': jnp.pad(raw['w1'], ((0, Dp - D), (0, Bp - B))),
        'w2': jnp.pad(raw['w2'], ((0, Bp - B), (0, Cp - C))),
        'bn1_g': jnp.pad(raw['bn1_g'], (0, Dp - D)).reshape(1, Dp),
        'bn1_b': jnp.pad(raw['bn1_b'], (0, Dp - D)).reshape(1, Dp),
        'bn2_g': jnp.pad(raw['bn2_g'], (0, Bp - B)).reshape(1, Bp),
        'bn2_b': jnp.pad(raw['bn2_b'], (0, Bp - B)).reshape(1, Bp),
    }


# --------------------------------------------------------------------------
# Pure-JAX reference (uses raw, unpadded params)
# --------------------------------------------------------------------------
def classblock_reference(raw, x, eps=1e-5, slope=0.1):
    mean = jnp.mean(x, axis=0)
    var = jnp.mean(jnp.square(x - mean), axis=0)        # biased, torch train
    y = (x - mean) * lax.rsqrt(var + eps) * raw['bn1_g'] + raw['bn1_b']
    y = jnp.where(y >= 0, y, slope * y)
    h = jnp.dot(y.astype(jnp.bfloat16), raw['w1'],
                preferred_element_type=jnp.float32)
    m2 = jnp.mean(h, axis=0)
    v2 = jnp.mean(jnp.square(h - m2), axis=0)
    feat = (h - m2) * lax.rsqrt(v2 + eps) * raw['bn2_g'] + raw['bn2_b']
    return jnp.dot(feat.astype(jnp.bfloat16), raw['w2'],
                   preferred_element_type=jnp.float32)


# TODO(synk): BatchNorm running_mean/running_var momentum updates (training
# side effect) are not emulated; the forward output uses batch stats only,
# matching torch train() semantics.

if __name__ == "__main__":
    key = jax.random.PRNGKey(0)
    pkey, xkey = jax.random.split(key)

    batch, input_dim, num_bottleneck, class_num = 16, 256, 512, 40
    raw = build_params(pkey, input_dim, class_num, num_bottleneck)
    prep = prepare_params(raw)               # one-time padding (outside jit)
    x = jax.random.normal(xkey, (batch, input_dim), jnp.float32)

    fwd = jax.jit(functools.partial(classblock_forward, class_num=class_num))
    cls = fwd(prep, x)
    jax.block_until_ready(cls)

    assert cls.shape == (batch, class_num), cls.shape
    assert bool(jnp.all(jnp.isfinite(cls)))

    ref = classblock_reference(raw, x)
    assert bool(jnp.all(jnp.abs(cls - ref) <= 2e-3 + 0.15 * jnp.abs(ref))), (
        float(jnp.max(jnp.abs(cls - ref))))
    print("KERNEL_OK")
</pallas_src>

<mosaic_0001>
module attributes {stable_mosaic.version = 11 : i64} {
  func.func @_classblock_kernel_single(%arg0: i32, %arg1: memref<16x256xf32, #tpu.memory_space<vmem>>, %arg2: memref<256x512xbf16, #tpu.memory_space<vmem>>, %arg3: memref<1x256xf32, #tpu.memory_space<vmem>>, %arg4: memref<1x256xf32, #tpu.memory_space<vmem>>, %arg5: memref<1x512xf32, #tpu.memory_space<vmem>>, %arg6: memref<1x512xf32, #tpu.memory_space<vmem>>, %arg7: memref<512x128xbf16, #tpu.memory_space<vmem>>, %arg8: memref<16x128xf32, #tpu.memory_space<vmem>>) attributes {dimension_semantics = [#tpu.dimension_semantics<arbitrary>], iteration_bounds = array<i64: 1>, scalar_prefetch = 0 : i64, scratch_operands = 0 : i64, tpu.core_type = #tpu.core_type<tc>, window_params = [{pipeline_mode = #tpu.pipeline_mode<synchronous>, transform_indices = @transform_0, window_bounds = array<i64: 16, 256>}, {pipeline_mode = #tpu.pipeline_mode<synchronous>, transform_indices = @transform_1, window_bounds = array<i64: 256, 512>}, {pipeline_mode = #tpu.pipeline_mode<synchronous>, transform_indices = @transform_2, window_bounds = array<i64: 1, 256>}, {pipeline_mode = #tpu.pipeline_mode<synchronous>, transform_indices = @transform_3, window_bounds = array<i64: 1, 256>}, {pipeline_mode = #tpu.pipeline_mode<synchronous>, transform_indices = @transform_4, window_bounds = array<i64: 1, 512>}, {pipeline_mode = #tpu.pipeline_mode<synchronous>, transform_indices = @transform_5, window_bounds = array<i64: 1, 512>}, {pipeline_mode = #tpu.pipeline_mode<synchronous>, transform_indices = @transform_6, window_bounds = array<i64: 512, 128>}, {pipeline_mode = #tpu.pipeline_mode<synchronous>, transform_indices = @transform_7, window_bounds = array<i64: 16, 128>}]} {
    %c0 = arith.constant 0 : index
    %c0_0 = arith.constant 0 : index
    %0 = vector.load %arg1[%c0, %c0_0] : memref<16x256xf32, #tpu.memory_space<vmem>>, vector<16x256xf32>
    %cst = arith.constant dense<0.000000e+00> : vector<256xf32>
    %1 = vector.multi_reduction <add>, %0, %cst [0] : vector<16x256xf32> to vector<256xf32>
    %2 = vector.shape_cast %1 : vector<256xf32> to vector<1x256xf32>
    %cst_1 = arith.constant 1.600000e+01 : f32
    %3 = vector.broadcast %cst_1 : f32 to vector<1x256xf32>
    %4 = arith.divf %2, %3 : vector<1x256xf32>
    %5 = vector.broadcast %4 : vector<1x256xf32> to vector<16x256xf32>
    %6 = arith.subf %0, %5 : vector<16x256xf32>
    %7 = arith.mulf %6, %6 : vector<16x256xf32>
    %cst_2 = arith.constant dense<0.000000e+00> : vector<256xf32>
    %8 = vector.multi_reduction <add>, %7, %cst_2 [0] : vector<16x256xf32> to vector<256xf32>
    %9 = vector.shape_cast %8 : vector<256xf32> to vector<1x256xf32>
    %cst_3 = arith.constant 1.600000e+01 : f32
    %10 = vector.broadcast %cst_3 : f32 to vector<1x256xf32>
    %11 = arith.divf %9, %10 : vector<1x256xf32>
    %c0_4 = arith.constant 0 : index
    %c0_5 = arith.constant 0 : index
    %12 = vector.load %arg3[%c0_4, %c0_5] : memref<1x256xf32, #tpu.memory_space<vmem>>, vector<1x256xf32>
    %cst_6 = arith.constant 9.99999974E-6 : f32
    %13 = vector.broadcast %cst_6 : f32 to vector<1x256xf32>
    %14 = arith.addf %11, %13 : vector<1x256xf32>
    %15 = math.rsqrt %14 : vector<1x256xf32>
    %16 = arith.mulf %12, %15 : vector<1x256xf32>
    %17 = vector.broadcast %16 : vector<1x256xf32> to vector<16x256xf32>
    %18 = arith.mulf %6, %17 : vector<16x256xf32>
    %c0_7 = arith.constant 0 : index
    %c0_8 = arith.constant 0 : index
    %19 = vector.load %arg4[%c0_7, %c0_8] : memref<1x256xf32, #tpu.memory_space<vmem>>, vector<1x256xf32>
    %20 = vector.broadcast %19 : vector<1x256xf32> to vector<16x256xf32>
    %21 = arith.addf %18, %20 : vector<16x256xf32>
    %cst_9 = arith.constant 1.000000e-01 : f32
    %22 = vector.broadcast %cst_9 : f32 to vector<16x256xf32>
    %23 = arith.mulf %22, %21 : vector<16x256xf32>
    %24 = arith.maximumf %21, %23 : vector<16x256xf32>
    %25 = arith.truncf %24 : vector<16x256xf32> to vector<16x256xbf16>
    %c0_10 = arith.constant 0 : index
    %c0_11 = arith.constant 0 : index
    %26 = vector.load %arg2[%c0_10, %c0_11] : memref<256x512xbf16, #tpu.memory_space<vmem>>, vector<256x512xbf16>
    %cst_12 = arith.constant dense<0.000000e+00> : vector<16x512xf32>
    %27 = tpu.matmul %25, %26, %cst_12 {dimension_numbers = #tpu.dot_dimension_numbers<[1], [0], [0], [1], [0, 0, 1, 1], [], []>} : vector<16x256xbf16>, vector<256x512xbf16>, vector<16x512xf32> -> vector<16x512xf32>
    %cst_13 = arith.constant dense<0.000000e+00> : vector<512xf32>
    %28 = vector.multi_reduction <add>, %27, %cst_13 [0] : vector<16x512xf32> to vector<512xf32>
    %29 = vector.shape_cast %28 : vector<512xf32> to vector<1x512xf32>
    %cst_14 = arith.constant 1.600000e+01 : f32
    %30 = vector.broadcast %cst_14 : f32 to vector<1x512xf32>
    %31 = arith.divf %29, %30 : vector<1x512xf32>
    %32 = vector.broadcast %31 : vector<1x512xf32> to vector<16x512xf32>
    %33 = arith.subf %27, %32 : vector<16x512xf32>
    %34 = arith.mulf %33, %33 : vector<16x512xf32>
    %cst_15 = arith.constant dense<0.000000e+00> : vector<512xf32>
    %35 = vector.multi_reduction <add>, %34, %cst_15 [0] : vector<16x512xf32> to vector<512xf32>
    %36 = vector.shape_cast %35 : vector<512xf32> to vector<1x512xf32>
    %cst_16 = arith.constant 1.600000e+01 : f32
    %37 = vector.broadcast %cst_16 : f32 to vector<1x512xf32>
    %38 = arith.divf %36, %37 : vector<1x512xf32>
    %c0_17 = arith.constant 0 : index
    %c0_18 = arith.constant 0 : index
    %39 = vector.load %arg5[%c0_17, %c0_18] : memref<1x512xf32, #tpu.memory_space<vmem>>, vector<1x512xf32>
    %cst_19 = arith.constant 9.99999974E-6 : f32
    %40 = vector.broadcast %cst_19 : f32 to vector<1x512xf32>
    %41 = arith.addf %38, %40 : vector<1x512xf32>
    %42 = math.rsqrt %41 : vector<1x512xf32>
    %43 = arith.mulf %39, %42 : vector<1x512xf32>
    %44 = vector.broadcast %43 : vector<1x512xf32> to vector<16x512xf32>
    %45 = arith.mulf %33, %44 : vector<16x512xf32>
    %c0_20 = arith.constant 0 : index
    %c0_21 = arith.constant 0 : index
    %46 = vector.load %arg6[%c0_20, %c0_21] : memref<1x512xf32, #tpu.memory_space<vmem>>, vector<1x512xf32>
    %47 = vector.broadcast %46 : vector<1x512xf32> to vector<16x512xf32>
    %48 = arith.addf %45, %47 : vector<16x512xf32>
    %49 = arith.truncf %48 : vector<16x512xf32> to vector<16x512xbf16>
    %c0_22 = arith.constant 0 : index
    %c0_23 = arith.constant 0 : index
    %50 = vector.load %arg7[%c0_22, %c0_23] : memref<512x128xbf16, #tpu.memory_space<vmem>>, vector<512x128xbf16>
    %cst_24 = arith.constant dense<0.000000e+00> : vector<16x128xf32>
    %51 = tpu.matmul %49, %50, %cst_24 {dimension_numbers = #tpu.dot_dimension_numbers<[1], [0], [0], [1], [0, 0, 1, 1], [], []>} : vector<16x512xbf16>, vector<512x128xbf16>, vector<16x128xf32> -> vector<16x128xf32>
    %c0_25 = arith.constant 0 : index
    %c0_26 = arith.constant 0 : index
    %52 = vector.load %arg8[%c0_25, %c0_26] : memref<16x128xf32, #tpu.memory_space<vmem>>, vector<16x128xf32>
    tpu.vector_store %arg8[%c0_25, %c0_26], %51 {strides = array<i32>} : memref<16x128xf32, #tpu.memory_space<vmem>>, vector<16x128xf32>,
    return
  }
  func.func @transform_0(%arg0: i32) -> (i32, i32) {
    %c0_i32 = arith.constant 0 : i32
    %c0_i32_0 = arith.constant 0 : i32
    %c0_i32_1 = arith.constant 0 : i32
    return %c0_i32, %c0_i32_0 : i32, i32
  }
  func.func @transform_1(%arg0: i32) -> (i32, i32) {
    %c0_i32 = arith.constant 0 : i32
    %c0_i32_0 = arith.constant 0 : i32
    %c0_i32_1 = arith.constant 0 : i32
    return %c0_i32, %c0_i32_0 : i32, i32
  }
  func.func @transform_2(%arg0: i32) -> (i32, i32) {
    %c0_i32 = arith.constant 0 : i32
    %c0_i32_0 = arith.constant 0 : i32
    %c0_i32_1 = arith.constant 0 : i32
    return %c0_i32, %c0_i32_0 : i32, i32
  }
  func.func @transform_3(%arg0: i32) -> (i32, i32) {
    %c0_i32 = arith.constant 0 : i32
    %c0_i32_0 = arith.constant 0 : i32
    %c0_i32_1 = arith.constant 0 : i32
    return %c0_i32, %c0_i32_0 : i32, i32
  }
  func.func @transform_4(%arg0: i32) -> (i32, i32) {
    %c0_i32 = arith.constant 0 : i32
    %c0_i32_0 = arith.constant 0 : i32
    %c0_i32_1 = arith.constant 0 : i32
    return %c0_i32, %c0_i32_0 : i32, i32
  }
  func.func @transform_5(%arg0: i32) -> (i32, i32) {
    %c0_i32 = arith.constant 0 : i32
    %c0_i32_0 = arith.constant 0 : i32
    %c0_i32_1 = arith.constant 0 : i32
    return %c0_i32, %c0_i32_0 : i32, i32
  }
  func.func @transform_6(%arg0: i32) -> (i32, i32) {
    %c0_i32 = arith.constant 0 : i32
    %c0_i32_0 = arith.constant 0 : i32
    %c0_i32_1 = arith.constant 0 : i32
    return %c0_i32, %c0_i32_0 : i32, i32
  }
  func.func @transform_7(%arg0: i32) -> (i32, i32) {
    %c0_i32 = arith.constant 0 : i32
    %c0_i32_0 = arith.constant 0 : i32
    %c0_i32_1 = arith.constant 0 : i32
    return %c0_i32, %c0_i32_0 : i32, i32
  }
}

</mosaic_0001>

<bundles_post_ra>
// kernel: classblock_forward.1
= control target key start
LH: loop header
LB: loop body
LE: loop exit
PB: predicated region body
PF: predicated region fallthrough
CT: control target
= control target key end

     0   :  { %12 = vsyncpa [#allocation3], 0  ;;  %s1814_s0 = inlined_call_operand.hbm [shape: f32[16,256], index: 0, kind: input, shape index: {}]   ;;  %s1815_s1 = inlined_call_operand.hbm [shape: bf16[256,512], index: 1, kind: input, shape index: {}]   ;;  %s1816_s2 = inlined_call_operand.hbm [shape: f32[1,256], index: 2, kind: input, shape index: {}]   ;;  %s1817_s3 = inlined_call_operand.hbm [shape: f32[1,256], index: 3, kind: input, shape index: {}]   ;;  %s1818_s4 = inlined_call_operand.vmem [shape: f32[1,512], index: 4, kind: input, shape index: {}]   ;;  %s1819_s5 = inlined_call_operand.hbm [shape: f32[1,512], index: 5, kind: input, shape index: {}]   ;;  %s1820_s6 = inlined_call_operand.hbm [shape: bf16[512,128], index: 6, kind: input, shape index: {}]   ;;  %s1821_s7 = inlined_call_operand.hbm [shape: f32[16,128], index: 7, kind: output, shape index: {}]  }
   0x1   :  { %13 = vsyncpa [#allocation6], 0 }
   0x2   :  { %14 = vsyncpa [#allocation9], 0 }
   0x3   :  { %15 = vsyncpa [#allocation12], 0 }
   0x4   :  { %16 = vsyncpa [#allocation4], 0  ;;  %s1670_s24 = smov [#allocation5]   ;;  %s1671_s26 = smov [#allocation8]  }
   0x5   :  { %s34_s25 = sshll.u32 %s1670_s24, 4  ;;  %s57_s27 = sshll.u32 %s1671_s26, 4  ;;  %s35_s25 = int_to_ptr.vmem [resolvable:$true] %s34_s25  ;;  %s58_s27 = int_to_ptr.vmem [resolvable:$true] %s57_s27 }
   0x6   :  { %s1528_s28 = scalar_lea.vmem %s35_s25, 8192  ;;  %p1533_p1 = scmp.lt.s32.totalorder %s35_s25, %s35_s25 }
   0x7   :  { %p1529_p0 = scmp.ne.s32.totalorder %s35_s25, %s1528_s28  ;;  %p1534_p2 = scmp.lt.s32.totalorder %s1528_s28, %s1528_s28 }
   0x9   :  { %p1535_p3 = por %p1534_p2, %p1533_p1 }
   0xb   :  { %p1536_p4 = pnand %p1535_p3, %p1529_p0 }
   0xd   :  { %1539 = shalt.err (!%p1536_p4)
}
   0xe   :  { %s1672_s29 = smov 256   ;;  %s1673_s30 = smov 16  }
   0xf   :  { %40 = dma.hbm_to_vmem [thread:$0]  %s1815_s1, 8192, %s35_s25, [#allocation6], %s1672_s29, %s1672_s29, %s1673_s30  }
  0x10   :  { %s1548_s10 = scalar_lea.vmem %s58_s27, 32  ;;  %p1553_p6 = scmp.lt.s32.totalorder %s58_s27, %s58_s27 }
  0x11   :  { %p1549_p5 = scmp.ne.s32.totalorder %s58_s27, %s1548_s10  ;;  %p1554_p7 = scmp.lt.s32.totalorder %s1548_s10, %s1548_s10 }
  0x13   :  { %p1555_p8 = por %p1554_p7, %p1553_p6 }
  0x15   :  { %p1556_p9 = pnand %p1555_p8, %p1549_p5 }
  0x17   :  { %1559 = shalt.err (!%p1556_p9)
}
  0x18   :  { %60 = dma.hbm_to_vmem [thread:$0]  %s1817_s3, 32, %s58_s27, [#allocation9]  }
  0x19   :  { %s1674_s13 = smov [#allocation2]   ;;  %s1675_s15 = smov [#allocation7]  }
  0x1a   :  { %s22_s14 = sshll.u32 %s1674_s13, 4  ;;  %s47_s16 = sshll.u32 %s1675_s15, 4  ;;  %s23_s14 = int_to_ptr.vmem [resolvable:$true] %s22_s14  ;;  %s48_s16 = int_to_ptr.vmem [resolvable:$true] %s47_s16 }
  0x1b   :  { %s1568_s17 = scalar_lea.vmem %s23_s14, 512  ;;  %p1573_p11 = scmp.lt.s32.totalorder %s23_s14, %s23_s14 }
  0x1c   :  { %p1569_p10 = scmp.ne.s32.totalorder %s23_s14, %s1568_s17  ;;  %p1574_p12 = scmp.lt.s32.totalorder %s1568_s17, %s1568_s17 }
  0x1e   :  { %p1575_p13 = por %p1574_p12, %p1573_p11 }
  0x20   :  { %p1576_p0 = pnand %p1575_p13, %p1569_p10 }
  0x22   :  { %1579 = shalt.err (!%p1576_p0)
}
  0x23   :  { %28 = dma.hbm_to_vmem [thread:$0]  %s1814_s0, 512, %s23_s14, [#allocation3], %s1672_s29, %s1672_s29, %s1673_s30  }
  0x24   :  { %s1588_s19 = scalar_lea.vmem %s48_s16, 32  ;;  %p1593_p2 = scmp.lt.s32.totalorder %s48_s16, %s48_s16 }
  0x25   :  { %p1589_p1 = scmp.ne.s32.totalorder %s48_s16, %s1588_s19  ;;  %p1594_p3 = scmp.lt.s32.totalorder %s1588_s19, %s1588_s19 }
  0x27   :  { %p1595_p4 = por %p1594_p3, %p1593_p2 }
  0x29   :  { %p1596_p5 = pnand %p1595_p4, %p1589_p1 }
  0x2b   :  { %1599 = shalt.err (!%p1596_p5)
}
  0x2c   :  { %50 = dma.hbm_to_vmem [thread:$0]  %s1816_s2, 32, %s48_s16, [#allocation6]  }
  0x2d   :  { %s1676_s21 = smov [#allocation10]   ;;  %s1677_s23 = smov [#allocation11]  }
  0x2e   :  { %s69_s22 = sshll.u32 %s1676_s21, 4  ;;  %s78_s24 = sshll.u32 %s1677_s23, 4  ;;  %s70_s22 = int_to_ptr.vmem [resolvable:$true] %s69_s22  ;;  %s79_s24 = int_to_ptr.vmem [resolvable:$true] %s78_s24 }
  0x2f   :  { %s1608_s25 = scalar_lea.vmem %s70_s22, 64  ;;  %p1613_p7 = scmp.lt.s32.totalorder %s70_s22, %s70_s22 }
  0x30   :  { %p1609_p6 = scmp.ne.s32.totalorder %s70_s22, %s1608_s25  ;;  %p1614_p8 = scmp.lt.s32.totalorder %s1608_s25, %s1608_s25 }
  0x32   :  { %p1615_p9 = por %p1614_p8, %p1613_p7 }
  0x34   :  { %p1616_p10 = pnand %p1615_p9, %p1609_p6 }
  0x36   :  { %1619 = shalt.err (!%p1616_p10)
}
  0x37   :  { %72 = dma.hbm_to_vmem [thread:$0]  %s1819_s5, 64, %s70_s22, [#allocation9]  }
  0x38   :  { %s1628_s27 = scalar_lea.vmem %s79_s24, 4096  ;;  %p1633_p12 = scmp.lt.s32.totalorder %s79_s24, %s79_s24 }
  0x39   :  { %p1629_p11 = scmp.ne.s32.totalorder %s79_s24, %s1628_s27  ;;  %p1634_p13 = scmp.lt.s32.totalorder %s1628_s27, %s1628_s27 }
  0x3b   :  { %p1635_p0 = por %p1634_p13, %p1633_p12 }
  0x3d   :  { %p1636_p1 = pnand %p1635_p0, %p1629_p11 }
  0x3f   :  { %1639 = shalt.err (!%p1636_p1)
}
  0x40   :  { %s1678_s2 = smov 64   ;;  %s1679_s28 = smov 4  }
  0x41   :  { %84 = dma.hbm_to_vmem [thread:$0]  %s1820_s6, 4096, %s79_s24, [#allocation12], %s1678_s2, %s1678_s2, %s1679_s28  }
  0x42   :  { %1660 = dma.done.wait [#allocation3], 512  }
  0x43   :  { %1661 = vsyncadd [#allocation3], 4294966784 }
  0x44   :  { %1662 = dma.done.wait [#allocation6], 8224  }
  0x45   :  { %1663 = vsyncadd [#allocation6], 4294959072 }
  0x46   :  { %1664 = dma.done.wait [#allocation9], 96  }
  0x47   :  { %1665 = vsyncadd [#allocation9], 4294967200 }
  0x48   :  { %1666 = dma.done.wait [#allocation12], 4096  }
  0x49   :  { %1667 = vsyncadd [#allocation12], 4294963200  ;;  %v1380_v0 = vld [vmem:[#allocation5 + $0xe4] ss:$16 sps:$4 sm:$0xff]   ;;  %v1382_v1 = vld [vmem:[#allocation5 + $0xec] ss:$16 sps:$4 sm:$0xff]  }
  0x4a   :  { %598 = vmatprep.subr.bf16.mxu0 %v1380_v0  ;;  %v1384_v2 = vld [vmem:[#allocation5 + $0xe0] ss:$16 sps:$4 sm:$0xff]   ;;  %v1385_v3 = vld [vmem:[#allocation5 + $0xe8] ss:$16 sps:$4 sm:$0xff]   ;;  %641 = vmatprep.subr.bf16.mxu1 %v1382_v1  ;;  %v1386_v4 = vld [vmem:[#allocation5 + $0xc4] ss:$16 sps:$4 sm:$0xff]  }
  0x4b   :  { %599 = vmatpush1.bf16.msra.mxu0 %v1384_v2  ;;  %642 = vmatpush1.bf16.msra.mxu1 %v1385_v3  ;;  %v1388_v5 = vld [vmem:[#allocation5 + $0xcc] ss:$16 sps:$4 sm:$0xff]   ;;  %v1390_v6 = vld [vmem:[#allocation5 + $0xc0] ss:$16 sps:$4 sm:$0xff]   ;;  %v1391_v7 = vld [vmem:[#allocation5 + $0xc8] ss:$16 sps:$4 sm:$0xff]  }
  0x4c   :  { %600 = vmatprep.subr.bf16.mxu0 %v1386_v4  ;;  %643 = vmatprep.subr.bf16.mxu1 %v1388_v5  ;;  %v1392_v8 = vld [vmem:[#allocation5 + $0xa4] ss:$16 sps:$4 sm:$0xff]   ;;  %v1394_v9 = vld [vmem:[#allocation5 + $0xac] ss:$16 sps:$4 sm:$0xff]   ;;  %v1396_v10 = vld [vmem:[#allocation5 + $0xa0] ss:$16 sps:$4 sm:$0xff]  }
  0x4d   :  { %v1397_v11 = vld [vmem:[#allocation5 + $0xa8] ss:$16 sps:$4 sm:$0xff]   ;;  %v1398_v12 = vld [vmem:[#allocation5 + $0x84] ss:$16 sps:$4 sm:$0xff]   ;;  %v1400_v13 = vld [vmem:[#allocation5 + $0x8c] ss:$16 sps:$4 sm:$0xff]  }
  0x4e   :  { %v1402_v14 = vld [vmem:[#allocation5 + $0x80] ss:$16 sps:$4 sm:$0xff]   ;;  %v1403_v15 = vld [vmem:[#allocation5 + $0x88] ss:$16 sps:$4 sm:$0xff]   ;;  %v1404_v16 = vld [vmem:[#allocation5 + $0x64] ss:$16 sps:$4 sm:$0xff]  }
  0x4f   :  { %601 = vmatpush1.bf16.msra.mxu0 %v1390_v6  ;;  %644 = vmatpush1.bf16.msra.mxu1 %v1391_v7  ;;  %v1406_v17 = vld [vmem:[#allocation5 + $0x6c] ss:$16 sps:$4 sm:$0xff]   ;;  %v1408_v18 = vld [vmem:[#allocation5 + $0x60] ss:$16 sps:$4 sm:$0xff]   ;;  %v1409_v19 = vld [vmem:[#allocation5 + $0x68] ss:$16 sps:$4 sm:$0xff]  }
  0x50   :  { %602 = vmatprep.subr.bf16.mxu0 %v1392_v8  ;;  %645 = vmatprep.subr.bf16.mxu1 %v1394_v9  ;;  %v1410_v20 = vld [vmem:[#allocation5 + $0x44] ss:$16 sps:$4 sm:$0xff]   ;;  %v1412_v21 = vld [vmem:[#allocation5 + $0x4c] ss:$16 sps:$4 sm:$0xff]   ;;  %v1414_v22 = vld [vmem:[#allocation5 + $0x40] ss:$16 sps:$4 sm:$0xff]  }
  0x51   :  { %v1415_v23 = vld [vmem:[#allocation5 + $0x48] ss:$16 sps:$4 sm:$0xff]   ;;  %v1416_v24 = vld [vmem:[#allocation5 + $0x24] ss:$16 sps:$4 sm:$0xff]   ;;  %v1418_v25 = vld [vmem:[#allocation5 + $0x2c] ss:$16 sps:$4 sm:$0xff]  }
  0x52   :  { %v1420_v26 = vld [vmem:[#allocation5 + $0x20] ss:$16 sps:$4 sm:$0xff]   ;;  %v1421_v27 = vld [vmem:[#allocation5 + $0x28] ss:$16 sps:$4 sm:$0xff]   ;;  %v1422_v28 = vld [vmem:[#allocation5 + $0x4] ss:$16 sps:$4 sm:$0xff]  }
  0x53   :  { %603 = vmatpush1.bf16.msra.mxu0 %v1396_v10  ;;  %646 = vmatpush1.bf16.msra.mxu1 %v1397_v11  ;;  %v1424_v29 = vld [vmem:[#allocation5 + $0xc] ss:$16 sps:$4 sm:$0xff]   ;;  %v1426_v30 = vld [vmem:[#allocation5] ss:$16 sps:$4 sm:$0xff]   ;;  %v1427_v31 = vld [vmem:[#allocation5 + $0x8] ss:$16 sps:$4 sm:$0xff]  }
  0x54   :  { %604 = vmatprep.subr.bf16.mxu0 %v1398_v12  ;;  %647 = vmatprep.subr.bf16.mxu1 %v1400_v13  ;;  %v1428_v32 = vld [vmem:[#allocation5 + $0x1e4] ss:$16 sps:$4 sm:$0xff]   ;;  %v1430_v33 = vld [vmem:[#allocation5 + $0x1ec] ss:$16 sps:$4 sm:$0xff]   ;;  %v1432_v34 = vld [vmem:[#allocation5 + $0x1e0] ss:$16 sps:$4 sm:$0xff]  }
  0x55   :  { %v1433_v35 = vld [vmem:[#allocation5 + $0x1e8] ss:$16 sps:$4 sm:$0xff]   ;;  %v1434_v36 = vld [vmem:[#allocation5 + $0x1c4] ss:$16 sps:$4 sm:$0xff]   ;;  %v1436_v37 = vld [vmem:[#allocation5 + $0x1cc] ss:$16 sps:$4 sm:$0xff]  }
  0x56   :  { %v1438_v38 = vld [vmem:[#allocation5 + $0x1c0] ss:$16 sps:$4 sm:$0xff]   ;;  %v1439_v39 = vld [vmem:[#allocation5 + $0x1c8] ss:$16 sps:$4 sm:$0xff]   ;;  %v1440_v40 = vld [vmem:[#allocation5 + $0x1a4] ss:$16 sps:$4 sm:$0xff]  }
  0x57   :  { %605 = vmatpush1.bf16.msra.mxu0 %v1402_v14  ;;  %648 = vmatpush1.bf16.msra.mxu1 %v1403_v15  ;;  %v1442_v41 = vld [vmem:[#allocation5 + $0x1ac] ss:$16 sps:$4 sm:$0xff]   ;;  %v1444_v42 = vld [vmem:[#allocation5 + $0x1a0] ss:$16 sps:$4 sm:$0xff]   ;;  %v1445_v43 = vld [vmem:[#allocation5 + $0x1a8] ss:$16 sps:$4 sm:$0xff]  }
  0x58   :  { %606 = vmatprep.subr.bf16.mxu0 %v1404_v16  ;;  %649 = vmatprep.subr.bf16.mxu1 %v1406_v17  ;;  %v1446_v44 = vld [vmem:[#allocation5 + $0x184] ss:$16 sps:$4 sm:$0xff]   ;;  %v1448_v45 = vld [vmem:[#allocation5 + $0x18c] ss:$16 sps:$4 sm:$0xff]   ;;  %v1450_v46 = vld [vmem:[#allocation5 + $0x180] ss:$16 sps:$4 sm:$0xff]  }
  0x59   :  { %v1451_v47 = vld [vmem:[#allocation5 + $0x188] ss:$16 sps:$4 sm:$0xff]   ;;  %v104_v48 = vld [vmem:[#allocation2] sm:$0xff]  ;;  %v106_v50 = vld [vmem:[#allocation2 + $0x10] sm:$0xff] }
  0x5a   :  { %v105_v49 = vld [vmem:[#allocation2 + $0x8] sm:$0xff]  ;;  %v107_v51 = vld [vmem:[#allocation2 + $0x18] sm:$0xff]  ;;  %v1452_v52 = vld [vmem:[#allocation5 + $0x164] ss:$16 sps:$4 sm:$0xff]   ;;  %v108_v54 = vadd.f32 %v106_v50, %v104_v48 }
  0x5b   :  { %607 = vmatpush1.bf16.msra.mxu0 %v1408_v18  ;;  %650 = vmatpush1.bf16.msra.mxu1 %v1409_v19  ;;  %v1454_v53 = vld [vmem:[#allocation5 + $0x16c] ss:$16 sps:$4 sm:$0xff]   ;;  %v115_v55 = vadd.f32 %v107_v51, %v105_v49  ;;  %v1456_v56 = vld [vmem:[#allocation5 + $0x160] ss:$16 sps:$4 sm:$0xff]   ;;  %v1457_v57 = vld [vmem:[#allocation5 + $0x168] ss:$16 sps:$4 sm:$0xff]  }
  0x5c   :  { %608 = vmatprep.subr.bf16.mxu0 %v1410_v20  ;;  %651 = vmatprep.subr.bf16.mxu1 %v1412_v21  ;;  %v109_v58 = vrot.slane %v108_v54, 4  ;;  %v1458_v60 = vld [vmem:[#allocation5 + $0x144] ss:$16 sps:$4 sm:$0xff]   ;;  %v1460_v61 = vld [vmem:[#allocation5 + $0x14c] ss:$16 sps:$4 sm:$0xff]  }
  0x5d   :  { %v116_v59 = vrot.slane %v115_v55, 4  ;;  %v1462_v0 = vld [vmem:[#allocation5 + $0x140] ss:$16 sps:$4 sm:$0xff]   ;;  %v1463_v1 = vld [vmem:[#allocation5 + $0x148] ss:$16 sps:$4 sm:$0xff]  }
  0x5e   :  { %v110_v62 = vadd.f32 %v109_v58, %v108_v54  ;;  %v1464_v4 = vld [vmem:[#allocation5 + $0x124] ss:$16 sps:$4 sm:$0xff]   ;;  %v1466_v5 = vld [vmem:[#allocation5 + $0x12c] ss:$16 sps:$4 sm:$0xff]   ;;  %v1468_v8 = vld [vmem:[#allocation5 + $0x120] ss:$16 sps:$4 sm:$0xff]  }
  0x5f   :  { %609 = vmatpush1.bf16.msra.mxu0 %v1414_v22  ;;  %652 = vmatpush1.bf16.msra.mxu1 %v1415_v23  ;;  %v117_v63 = vadd.f32 %v116_v59, %v115_v55  ;;  %v1469_v9 = vld [vmem:[#allocation5 + $0x128] ss:$16 sps:$4 sm:$0xff]   ;;  %v1470_v12 = vld [vmem:[#allocation5 + $0x104] ss:$16 sps:$4 sm:$0xff]   ;;  %v1472_v13 = vld [vmem:[#allocation5 + $0x10c] ss:$16 sps:$4 sm:$0xff]  }
  0x60   :  { %610 = vmatprep.subr.bf16.mxu0 %v1416_v24  ;;  %653 = vmatprep.subr.bf16.mxu1 %v1418_v25  ;;  %v111_v2 = vrot.slane %v110_v62, 2  ;;  %v1474_v16 = vld [vmem:[#allocation5 + $0x100] ss:$16 sps:$4 sm:$0xff]   ;;  %v1475_v17 = vld [vmem:[#allocation5 + $0x108] ss:$16 sps:$4 sm:$0xff]  }
  0x61   :  { %v118_v3 = vrot.slane %v117_v63, 2 }
  0x62   :  { %v112_v6 = vadd.f32 %v111_v2, %v110_v62 }
  0x63   :  { %611 = vmatpush1.bf16.msra.mxu0 %v1420_v26  ;;  %654 = vmatpush1.bf16.msra.mxu1 %v1421_v27  ;;  %v119_v7 = vadd.f32 %v118_v3, %v117_v63 }
  0x64   :  { %612 = vmatprep.subr.bf16.mxu0 %v1422_v28  ;;  %655 = vmatprep.subr.bf16.mxu1 %v1424_v29  ;;  %v113_v10 = vrot.slane %v112_v6, 1 }
  0x65   :  { %v120_v11 = vrot.slane %v119_v7, 1 }
  0x66   :  { %v114_v14 = vadd.f32 %v113_v10, %v112_v6 }
  0x67   :  { %613 = vmatpush1.bf16.msra.mxu0 %v1426_v30  ;;  %656 = vmatpush1.bf16.msra.mxu1 %v1427_v31  ;;  %v121_v15 = vadd.f32 %v120_v11, %v119_v7 }
  0x68   :  { %614 = vmatprep.subr.bf16.mxu0 %v1428_v32  ;;  %657 = vmatprep.subr.bf16.mxu1 %v1430_v33  ;;  %v123_v18 = vmul.f32 0.0625, %v114_v14 }
  0x69   :  { %v124_v19 = vmul.f32 0.0625, %v121_v15 }
  0x6a   :  { %v125_v20 = vsub.f32 %v104_v48, %v123_v18  ;;  %v127_v22 = vsub.f32 %v106_v50, %v123_v18  ;;  %v160_v48 = vlaneseq }
  0x6b   :  { %615 = vmatpush2.bf16.msra.mxu0 %v1432_v34  ;;  %658 = vmatpush2.bf16.msra.mxu1 %v1433_v35  ;;  %v126_v21 = vsub.f32 %v105_v49, %v124_v19  ;;  %v128_v23 = vsub.f32 %v107_v51, %v124_v19 }
  0x6c   :  { %616 = vmatprep.subr.bf16.mxu0 %v1434_v36  ;;  %659 = vmatprep.subr.bf16.mxu1 %v1436_v37  ;;  %v129_v24 = vmul.f32 %v125_v20, %v125_v20  ;;  %v131_v26 = vmul.f32 %v127_v22, %v127_v22  ;;  %v1742_v50 = vshrl.u32 %v160_v48, 7  ;;  %v1504_v48 = vld [vmem:[#allocation11 + $0x40] sm:$0xff]  }
  0x6d   :  { %v130_v25 = vmul.f32 %v126_v21, %v126_v21  ;;  %v132_v27 = vmul.f32 %v128_v23, %v128_v23 }
  0x6e   :  { %v133_v28 = vadd.f32 %v131_v26, %v129_v24  ;;  %v1750_v58 = vsub.s32 0, %v1742_v50  ;;  %v1753_v59 = vsub.s32 1, %v1742_v50  ;;  %v1480_v24 = vld [vmem:[#allocation11 + $0x70] sm:$0xff]  }
  0x6f   :  { %617 = vmatpush2.bf16.msra.mxu0 %v1438_v38  ;;  %660 = vmatpush2.bf16.msra.mxu1 %v1439_v39  ;;  %v140_v29 = vadd.f32 %v132_v27, %v130_v25  ;;  %v1481_v25 = vld [vmem:[#allocation11 + $0xf0] sm:$0xff]  }
  0x70   :  { %618 = vmatprep.subr.bf16.mxu0 %v1440_v40  ;;  %661 = vmatprep.subr.bf16.mxu1 %v1442_v41  ;;  %v134_v30 = vrot.slane %v133_v28, 4  ;;  %v1482_v26 = vld [vmem:[#allocation11 + $0x30] sm:$0xff]  }
  0x71   :  { %v141_v31 = vrot.slane %v140_v29, 4  ;;  %v1483_v27 = vld [vmem:[#allocation11 + $0xb0] sm:$0xff]  }
  0x72   :  { %v135_v32 = vadd.f32 %v134_v30, %v133_v28  ;;  %v1484_v28 = vld [vmem:[#allocation11 + $0x68] sm:$0xff]  }
  0x73   :  { %619 = vmatpush2.bf16.msra.mxu0 %v1444_v42  ;;  %662 = vmatpush2.bf16.msra.mxu1 %v1445_v43  ;;  %v142_v33 = vadd.f32 %v141_v31, %v140_v29  ;;  %v1485_v29 = vld [vmem:[#allocation11 + $0xe8] sm:$0xff]  }
  0x74   :  { %620 = vmatprep.subr.bf16.mxu0 %v1446_v44  ;;  %663 = vmatprep.subr.bf16.mxu1 %v1448_v45  ;;  %v136_v34 = vrot.slane %v135_v32, 2  ;;  %v1486_v30 = vld [vmem:[#allocation11 + $0x28] sm:$0xff]  }
  0x75   :  { %v143_v35 = vrot.slane %v142_v33, 2  ;;  %v1487_v31 = vld [vmem:[#allocation11 + $0xa8] sm:$0xff]  }
  0x76   :  { %v137_v36 = vadd.f32 %v136_v34, %v135_v32  ;;  %v1488_v32 = vld [vmem:[#allocation11 + $0x60] sm:$0xff]  }
  0x77   :  { %621 = vmatpush2.bf16.msra.mxu0 %v1450_v46  ;;  %664 = vmatpush2.bf16.msra.mxu1 %v1451_v47  ;;  %v144_v37 = vadd.f32 %v143_v35, %v142_v33  ;;  %v1680_v46 = vmov 1966171168   ;;  %v1489_v33 = vld [vmem:[#allocation11 + $0xe0] sm:$0xff]  }
  0x78   :  { %622 = vmatprep.subr.bf16.mxu0 %v1452_v52  ;;  %665 = vmatprep.subr.bf16.mxu1 %v1454_v53  ;;  %v138_v38 = vrot.slane %v137_v36, 1  ;;  %v158_v47 = vunpack.c.l.s4 %v1680_v46  ;;  %v1490_v34 = vld [vmem:[#allocation11 + $0x20] sm:$0xff]   ;;  %v1502_v46 = vld [vmem:[#allocation11 + $0x8] sm:$0xff]  }
  0x79   :  { %v145_v39 = vrot.slane %v144_v37, 1  ;;  %v1491_v35 = vld [vmem:[#allocation11 + $0xa0] sm:$0xff]  }
  0x7a   :  { %v139_v40 = vadd.f32 %v138_v38, %v137_v36  ;;  %v159_v49 = vunpack.c.0.s8 %v158_v47  ;;  %v1492_v36 = vld [vmem:[#allocation11 + $0x58] sm:$0xff]   ;;  %v1503_v47 = vld [vmem:[#allocation11 + $0x88] sm:$0xff]  }
  0x7b   :  { %623 = vmatpush2.bf16.msra.mxu0 %v1456_v56  ;;  %666 = vmatpush2.bf16.msra.mxu1 %v1457_v57  ;;  %v146_v41 = vadd.f32 %v145_v39, %v144_v37  ;;  %v149_v56 = vld [vmem:[#allocation7] sm:$0x3] }
  0x7c   :  { %624 = vmatprep.subr.bf16.mxu0 %v1458_v60  ;;  %667 = vmatprep.subr.bf16.mxu1 %v1460_v61  ;;  %v147_v42 = vmul.f32 0.0625, %v139_v40  ;;  %v1745_v52 = vsub.s32 %v159_v49, %v1742_v50  ;;  %v188_v60 = vld [vmem:[#allocation8] sm:$0x3]  ;;  %v1496_v40 = vld [vmem:[#allocation11 + $0x50] sm:$0xff]   ;;  %v1505_v49 = vld [vmem:[#allocation11 + $0xc0] sm:$0xff]  }
  0x7d   :  { %v148_v43 = vmul.f32 0.0625, %v146_v41  ;;  %v193_v63 = vrot.slane %v188_v60, %v1750_v58  ;;  %v1493_v37 = vld [vmem:[#allocation11 + $0xd8] sm:$0xff]   ;;  %v1497_v41 = vld [vmem:[#allocation11 + $0xd0] sm:$0xff]  }
  0x7e   :  { %v150_v44 = vadd.f32 1e-05, %v147_v42  ;;  %v1494_v38 = vld [vmem:[#allocation11 + $0x18] sm:$0xff]   ;;  %v1498_v42 = vld [vmem:[#allocation11 + $0x10] sm:$0xff]  }
  0x7f   :  { %625 = vmatpush2.bf16.msra.mxu0 %v1462_v0  ;;  %668 = vmatpush2.bf16.msra.mxu1 %v1463_v1  ;;  %v151_v45 = vadd.f32 1e-05, %v148_v43  ;;  %v197_v0 = vrot.slane %v188_v60, %v1753_v59  ;;  %v1495_v39 = vld [vmem:[#allocation11 + $0x98] sm:$0xff]   ;;  %v1499_v43 = vld [vmem:[#allocation11 + $0x90] sm:$0xff]  }
  0x80   :  { %626 = vmatprep.subr.bf16.mxu0 %v1464_v4  ;;  %669 = vmatprep.subr.bf16.mxu1 %v1466_v5  ;;  %1508 = vrsqrt.f32 %v150_v44  ;;  %v1500_v44 = vld [vmem:[#allocation11 + $0x48] sm:$0xff]  }
  0x81   :  { %1510 = vrsqrt.f32 %v151_v45  ;;  %v1501_v45 = vld [vmem:[#allocation11 + $0xc8] sm:$0xff]  }
  0x83   :  { %627 = vmatpush2.bf16.msra.mxu0 %v1468_v8  ;;  %670 = vmatpush2.bf16.msra.mxu1 %v1469_v9 }
  0x84   :  { %628 = vmatprep.subr.bf16.mxu0 %v1470_v12  ;;  %671 = vmatprep.subr.bf16.mxu1 %v1472_v13 }
  0x87   :  { %629 = vmatpush2.bf16.msra.mxu0 %v1474_v16  ;;  %672 = vmatpush2.bf16.msra.mxu1 %v1475_v17 }
  0x8d   :  { %v1509_v51 = vpop.eup %1508 }
  0x8e   :  { %v1511_v53 = vpop.eup %1510 }
  0x8f   :  { %v156_v54 = vcombine.low %v1509_v51, %v1511_v53  ;;  %v1506_v51 = vld [vmem:[#allocation11] sm:$0xff]  }
  0x90   :  { %v1507_v53 = vld [vmem:[#allocation11 + $0x80] sm:$0xff]  }
  0x91   :  { %v163_v55 = vrot.slane %v156_v54, %v1745_v52 }
  0x93   :  { %v170_v57 = vrot.slane %v163_v55, %v1745_v52 }
  0x95   :  { %v172_v61 = vmul.f32 %v170_v57, %v149_v56 }
  0x97   :  { %v181_v62 = vrot.slane %v172_v61, %v1753_v59  ;;  %v177_v1 = vrot.slane %v172_v61, %v1750_v58 }
  0x99   :  { %v185_v2 = vmul.f32 %v181_v62, %v126_v21  ;;  %v187_v3 = vmul.f32 %v181_v62, %v128_v23  ;;  %v184_v4 = vmul.f32 %v177_v1, %v125_v20  ;;  %v186_v5 = vmul.f32 %v177_v1, %v127_v22  ;;  %v1476_v20 = vld [vmem:[#allocation11 + $0x78] sm:$0xff]  }
  0x9a   :  { %v1477_v21 = vld [vmem:[#allocation11 + $0xf8] sm:$0xff]   ;;  %1322 = vmatprep.subr.bf16.mxu0 %v1476_v20 }
  0x9b   :  { %v201_v6 = vadd.f32 %v197_v0, %v185_v2  ;;  %v203_v7 = vadd.f32 %v197_v0, %v187_v3  ;;  %v200_v8 = vadd.f32 %v193_v63, %v184_v4  ;;  %v202_v9 = vadd.f32 %v193_v63, %v186_v5  ;;  %v1478_v22 = vld [vmem:[#allocation11 + $0x38] sm:$0xff]   ;;  %1344 = vmatprep.subr.bf16.mxu1 %v1477_v21 }
  0x9c   :  { %v1479_v23 = vld [vmem:[#allocation11 + $0xb8] sm:$0xff]  }
  0x9d   :  { %v205_v10 = vmul.f32 0.1, %v201_v6  ;;  %v207_v11 = vmul.f32 0.1, %v203_v7  ;;  %v204_v12 = vmul.f32 0.1, %v200_v8 }
  0x9e   :  { %v206_v13 = vmul.f32 0.1, %v202_v9 }
  0x9f   :  { %v209_v14 = vmax.f32 %v201_v6, %v205_v10  ;;  %v211_v15 = vmax.f32 %v203_v7, %v207_v11  ;;  %v208_v16 = vmax.f32 %v200_v8, %v204_v12 }
  0xa0   :  { %v210_v17 = vmax.f32 %v202_v9, %v206_v13 }
  0xa1   :  { %v213_v18 = vpack.c.bf16 %v211_v15, %v209_v14 }
  0xa2   :  { %v212_v19 = vpack.c.bf16 %v210_v17, %v208_v16 }
  0xa3   :  { %630 = vmatprep.mubr.bf16.mxu0 %v213_v18  ;;  %673 = vmatprep.mubr.bf16.mxu1 %v213_v18 }
  0xa4   :  { %631 = vmatmul.mubr.bf16.vlgmr.msra.gmra.mxu0 %v212_v19  ;;  %674 = vmatmul.mubr.bf16.vlgmr.msra.gmra.mxu1 %v212_v19 }
  0xa5   :  { %1323 = vmatpush3.bf16.msra.mxu0 %v1478_v22  ;;  %1345 = vmatpush3.bf16.msra.mxu1 %v1479_v23 }
  0xa6   :  { %1324 = vmatprep.subr.bf16.mxu0 %v1480_v24  ;;  %1346 = vmatprep.subr.bf16.mxu1 %v1481_v25 }
  0xa9   :  { %1325 = vmatpush3.bf16.msra.mxu0 %v1482_v26  ;;  %1347 = vmatpush3.bf16.msra.mxu1 %v1483_v27 }
  0xaa   :  { %1326 = vmatprep.subr.bf16.mxu0 %v1484_v28  ;;  %1348 = vmatprep.subr.bf16.mxu1 %v1485_v29 }
  0xad   :  { %1327 = vmatpush3.bf16.msra.mxu0 %v1486_v30  ;;  %1349 = vmatpush3.bf16.msra.mxu1 %v1487_v31 }
  0xae   :  { %1328 = vmatprep.subr.bf16.mxu0 %v1488_v32  ;;  %1350 = vmatprep.subr.bf16.mxu1 %v1489_v33 }
  0xb1   :  { %1329 = vmatpush3.bf16.msra.mxu0 %v1490_v34  ;;  %1351 = vmatpush3.bf16.msra.mxu1 %v1491_v35 }
  0xb2   :  { %1330 = vmatprep.subr.bf16.mxu0 %v1492_v36  ;;  %1352 = vmatprep.subr.bf16.mxu1 %v1493_v37 }
  0xb5   :  { %1331 = vmatpush3.bf16.msra.mxu0 %v1494_v38  ;;  %1353 = vmatpush3.bf16.msra.mxu1 %v1495_v39 }
  0xb6   :  { %1332 = vmatprep.subr.bf16.mxu0 %v1496_v40  ;;  %1354 = vmatprep.subr.bf16.mxu1 %v1497_v41 }
  0xb9   :  { %1333 = vmatpush3.bf16.msra.mxu0 %v1498_v42  ;;  %1355 = vmatpush3.bf16.msra.mxu1 %v1499_v43 }
  0xba   :  { %1334 = vmatprep.subr.bf16.mxu0 %v1500_v44  ;;  %1356 = vmatprep.subr.bf16.mxu1 %v1501_v45 }
  0xbd   :  { %1335 = vmatpush3.bf16.msra.mxu0 %v1502_v46  ;;  %1357 = vmatpush3.bf16.msra.mxu1 %v1503_v47 }
  0xbe   :  { %1336 = vmatprep.subr.bf16.mxu0 %v1504_v48  ;;  %1358 = vmatprep.subr.bf16.mxu1 %v1505_v49 }
  0xc1   :  { %1337 = vmatpush3.bf16.msra.mxu0 %v1506_v51  ;;  %1359 = vmatpush3.bf16.msra.mxu1 %v1507_v53 }
 0x164   :  { %v632_v54 = vpop.f32.mrf.mxu0  ;;  %v675_v55 = vpop.f32.mrf.mxu1 }
 0x166   :  { %v634_v56 = vpop.f32.mrf.mxu0  ;;  %v677_v57 = vpop.f32.mrf.mxu1 }
 0x168   :  { %v636_v60 = vpop.f32.mrf.mxu0  ;;  %v679_v61 = vpop.f32.mrf.mxu1 }
 0x169   :  { %v684_v62 = vadd.f32 %v636_v60, %v632_v54  ;;  %v698_v63 = vadd.f32 %v679_v61, %v675_v55 }
 0x16a   :  { %v638_v0 = vpop.f32.mrf.mxu0  ;;  %v681_v1 = vpop.f32.mrf.mxu1 }
 0x16b   :  { %v685_v2 = vrot.slane %v684_v62, 4  ;;  %v699_v3 = vrot.slane %v698_v63, 4  ;;  %v691_v4 = vadd.f32 %v638_v0, %v634_v56  ;;  %v705_v5 = vadd.f32 %v681_v1, %v677_v57 }
 0x16d   :  { %v686_v6 = vadd.f32 %v685_v2, %v684_v62  ;;  %v700_v7 = vadd.f32 %v699_v3, %v698_v63  ;;  %v692_v8 = vrot.slane %v691_v4, 4  ;;  %v706_v9 = vrot.slane %v705_v5, 4 }
 0x16f   :  { %v687_v10 = vrot.slane %v686_v6, 2  ;;  %v701_v11 = vrot.slane %v700_v7, 2  ;;  %v693_v12 = vadd.f32 %v692_v8, %v691_v4  ;;  %v707_v13 = vadd.f32 %v706_v9, %v705_v5 }
 0x171   :  { %v688_v14 = vadd.f32 %v687_v10, %v686_v6  ;;  %v702_v15 = vadd.f32 %v701_v11, %v700_v7  ;;  %v694_v16 = vrot.slane %v693_v12, 2  ;;  %v708_v17 = vrot.slane %v707_v13, 2 }
 0x173   :  { %v689_v18 = vrot.slane %v688_v14, 1  ;;  %v703_v19 = vrot.slane %v702_v15, 1  ;;  %v695_v20 = vadd.f32 %v694_v16, %v693_v12  ;;  %v709_v21 = vadd.f32 %v708_v17, %v707_v13 }
 0x175   :  { %v690_v22 = vadd.f32 %v689_v18, %v688_v14  ;;  %v704_v23 = vadd.f32 %v703_v19, %v702_v15  ;;  %v696_v24 = vrot.slane %v695_v20, 1  ;;  %v710_v25 = vrot.slane %v709_v21, 1 }
 0x177   :  { %v712_v26 = vmul.f32 0.0625, %v690_v22  ;;  %v714_v27 = vmul.f32 0.0625, %v704_v23  ;;  %v697_v28 = vadd.f32 %v696_v24, %v695_v20  ;;  %v711_v29 = vadd.f32 %v710_v25, %v709_v21 }
 0x179   :  { %v1759_v30 = vsub.f32 %v632_v54, %v712_v26  ;;  %v1761_v31 = vsub.f32 %v636_v60, %v712_v26  ;;  %v1763_v32 = vsub.f32 %v675_v55, %v714_v27  ;;  %v1765_v33 = vsub.f32 %v679_v61, %v714_v27 }
 0x17a   :  { %v713_v34 = vmul.f32 0.0625, %v697_v28  ;;  %v715_v35 = vmul.f32 0.0625, %v711_v29 }
 0x17b   :  { %v724_v36 = vmul.f32 %v1759_v30, %v1759_v30  ;;  %v728_v37 = vmul.f32 %v1761_v31, %v1761_v31  ;;  %v726_v38 = vmul.f32 %v1763_v32, %v1763_v32  ;;  %v730_v39 = vmul.f32 %v1765_v33, %v1765_v33 }
 0x17c   :  { %v1775_v40 = vsub.f32 %v634_v56, %v713_v34  ;;  %v1777_v41 = vsub.f32 %v638_v0, %v713_v34  ;;  %v1779_v42 = vsub.f32 %v677_v57, %v715_v35  ;;  %v1781_v43 = vsub.f32 %v681_v1, %v715_v35 }
 0x17d   :  { %v732_v44 = vadd.f32 %v728_v37, %v724_v36  ;;  %v746_v45 = vadd.f32 %v730_v39, %v726_v38  ;;  %v764_v37 = vld [vmem:[%s1818_s4] sm:$0xf]  ;;  %v818_v39 = vsub.s32 3, %v1742_v50  ;;  %s1681_s4 = smov [#allocation13]  }
 0x17e   :  { %v725_v46 = vmul.f32 %v1775_v40, %v1775_v40  ;;  %v729_v47 = vmul.f32 %v1777_v41, %v1777_v41  ;;  %v727_v48 = vmul.f32 %v1779_v42, %v1779_v42  ;;  %v731_v49 = vmul.f32 %v1781_v43, %v1781_v43  ;;  %s1211_s8 = sshll.u32 %s1681_s4, 4  ;;  %s1212_s8 = int_to_ptr.vmem [resolvable:$true] %s1211_s8 }
 0x17f   :  { %v733_v51 = vrot.slane %v732_v44, 4  ;;  %v747_v53 = vrot.slane %v746_v45, 4  ;;  %s1640_s9 = scalar_lea.vmem %s1212_s8, 256  ;;  %p1645_p3 = scmp.lt.s32.totalorder %s1212_s8, %s1212_s8 }
 0x180   :  { %v739_v54 = vadd.f32 %v729_v47, %v725_v46  ;;  %v753_v55 = vadd.f32 %v731_v49, %v727_v48  ;;  %p1641_p2 = scmp.ne.s32.totalorder %s1212_s8, %s1640_s9  ;;  %p1646_p4 = scmp.lt.s32.totalorder %s1640_s9, %s1640_s9 }
 0x181   :  { %v734_v56 = vadd.f32 %v733_v51, %v732_v44  ;;  %v748_v57 = vadd.f32 %v747_v53, %v746_v45  ;;  %v832_v44 = vld [vmem:[#allocation10] sm:$0xf]  ;;  %v814_v45 = vsub.s32 2, %v1742_v50 }
 0x182   :  { %v740_v60 = vrot.slane %v739_v54, 4  ;;  %v754_v61 = vrot.slane %v753_v55, 4  ;;  %v849_v47 = vrot.slane %v832_v44, %v818_v39  ;;  %v841_v48 = vrot.slane %v832_v44, %v1753_v59  ;;  %p1647_p5 = por %p1646_p4, %p1645_p3 }
 0x183   :  { %v735_v62 = vrot.slane %v734_v56, 2  ;;  %v749_v63 = vrot.slane %v748_v57, 2 }
 0x184   :  { %v741_v0 = vadd.f32 %v740_v60, %v739_v54  ;;  %v755_v1 = vadd.f32 %v754_v61, %v753_v55  ;;  %v837_v55 = vrot.slane %v832_v44, %v1750_v58  ;;  %p1648_p6 = pnand %p1647_p5, %p1641_p2 }
 0x185   :  { %v736_v2 = vadd.f32 %v735_v62, %v734_v56  ;;  %v750_v3 = vadd.f32 %v749_v63, %v748_v57  ;;  %v845_v56 = vrot.slane %v832_v44, %v814_v45 }
 0x186   :  { %v742_v4 = vrot.slane %v741_v0, 2  ;;  %v756_v5 = vrot.slane %v755_v1, 2 }
 0x187   :  { %v737_v6 = vrot.slane %v736_v2, 1  ;;  %v751_v7 = vrot.slane %v750_v3, 1 }
 0x188   :  { %v743_v8 = vadd.f32 %v742_v4, %v741_v0  ;;  %v757_v9 = vadd.f32 %v756_v5, %v755_v1 }
 0x189   :  { %v738_v10 = vadd.f32 %v737_v6, %v736_v2  ;;  %v752_v11 = vadd.f32 %v751_v7, %v750_v3 }
 0x18a   :  { %v744_v12 = vrot.slane %v743_v8, 1  ;;  %v758_v13 = vrot.slane %v757_v9, 1 }
 0x18b   :  { %v760_v14 = vmul.f32 0.0625, %v738_v10  ;;  %v762_v15 = vmul.f32 0.0625, %v752_v11 }
 0x18c   :  { %v745_v16 = vadd.f32 %v744_v12, %v743_v8  ;;  %v759_v17 = vadd.f32 %v758_v13, %v757_v9 }
 0x18d   :  { %v765_v18 = vadd.f32 1e-05, %v760_v14  ;;  %v767_v19 = vadd.f32 1e-05, %v762_v15 }
 0x18e   :  { %v761_v20 = vmul.f32 0.0625, %v745_v16  ;;  %v763_v21 = vmul.f32 0.0625, %v759_v17 }
 0x18f   :  { %1512 = vrsqrt.f32 %v765_v18 }
 0x190   :  { %v766_v22 = vadd.f32 1e-05, %v761_v20  ;;  %v768_v23 = vadd.f32 1e-05, %v763_v21  ;;  %1514 = vrsqrt.f32 %v767_v19 }
 0x192   :  { %1516 = vrsqrt.f32 %v766_v22 }
 0x193   :  { %1518 = vrsqrt.f32 %v768_v23 }
 0x19c   :  { %v1513_v24 = vpop.eup %1512 }
 0x19d   :  { %v1515_v25 = vpop.eup %1514 }
 0x19f   :  { %v1517_v26 = vpop.eup %1516 }
 0x1a0   :  { %v1519_v27 = vpop.eup %1518  ;;  %v777_v28 = vcombine.low %v1513_v24, %v1517_v26 }
 0x1a1   :  { %v778_v29 = vcombine.low %v1515_v25, %v1519_v27 }
 0x1a2   :  { %v785_v34 = vrot.slane %v777_v28, %v1745_v52 }
 0x1a3   :  { %v792_v35 = vrot.slane %v778_v29, %v1745_v52 }
 0x1a5   :  { %v793_v36 = vcombine.low %v785_v34, %v792_v35 }
 0x1a7   :  { %v800_v38 = vrot.slane %v793_v36, %v1745_v52 }
 0x1a9   :  { %v802_v46 = vmul.f32 %v800_v38, %v764_v37 }
 0x1ab   :  { %v819_v49 = vrot.slane %v802_v46, %v818_v39  ;;  %v811_v51 = vrot.slane %v802_v46, %v1753_v59  ;;  %v807_v53 = vrot.slane %v802_v46, %v1750_v58  ;;  %v815_v54 = vrot.slane %v802_v46, %v814_v45 }
 0x1ad   :  { %v827_v52 = vmul.f32 %v819_v49, %v1779_v42  ;;  %v831_v57 = vmul.f32 %v819_v49, %v1781_v43  ;;  %v825_v60 = vmul.f32 %v811_v51, %v1775_v40  ;;  %v829_v50 = vmul.f32 %v811_v51, %v1777_v41 }
 0x1ae   :  { %v824_v61 = vmul.f32 %v807_v53, %v1759_v30  ;;  %v828_v62 = vmul.f32 %v807_v53, %v1761_v31  ;;  %v826_v59 = vmul.f32 %v815_v54, %v1763_v32  ;;  %v830_v63 = vmul.f32 %v815_v54, %v1765_v33 }
 0x1af   :  { %v861_v0 = vadd.f32 %v849_v47, %v831_v57  ;;  %v855_v1 = vadd.f32 %v841_v48, %v825_v60  ;;  %v859_v58 = vadd.f32 %v841_v48, %v829_v50  ;;  %v857_v2 = vadd.f32 %v849_v47, %v827_v52 }
 0x1b0   :  { %v854_v3 = vadd.f32 %v837_v55, %v824_v61  ;;  %v858_v42 = vadd.f32 %v837_v55, %v828_v62  ;;  %v856_v4 = vadd.f32 %v845_v56, %v826_v59  ;;  %v860_v43 = vadd.f32 %v845_v56, %v830_v63 }
 0x1b1   :  { %v863_v5 = vpack.c.bf16 %v859_v58, %v855_v1  ;;  %v865_v40 = vpack.c.bf16 %v861_v0, %v857_v2 }
 0x1b2   :  { %v862_v6 = vpack.c.bf16 %v858_v42, %v854_v3  ;;  %v864_v41 = vpack.c.bf16 %v860_v43, %v856_v4 }
 0x1b3   :  { %1154 = vmatprep.mubr.bf16.mxu0 %v863_v5  ;;  %1195 = vmatprep.mubr.bf16.mxu1 %v865_v40 }
 0x1b4   :  { %1155 = vmatmul.mubr.bf16.vlgmr.msra.gmra.mxu0 %v862_v6  ;;  %1196 = vmatmul.mubr.bf16.vlgmr.msra.gmra.mxu1 %v864_v41 }
 0x274   :  { %v1338_v30 = vpop.f32.mrf.mxu0  ;;  %v1360_v31 = vpop.f32.mrf.mxu1 }
 0x276   :  { %v1339_v32 = vpop.f32.mrf.mxu0  ;;  %v1361_v33 = vpop.f32.mrf.mxu1 }
 0x277   :  { %v1340_v7 = vadd.f32 %v1339_v32, %v1338_v30  ;;  %v1362_v8 = vadd.f32 %v1361_v33, %v1360_v31 }
 0x278   :  { %v1341_v9 = vpop.f32.mrf.mxu0  ;;  %v1363_v10 = vpop.f32.mrf.mxu1 }
 0x279   :  { %v1198_v11 = vadd.f32 %v1362_v8, %v1340_v7 }
 0x27a   :  { %v1342_v12 = vpop.f32.mrf.mxu0  ;;  %v1364_v13 = vpop.f32.mrf.mxu1 }
 0x27b   :  { %1204 = vst [vmem:[#allocation13] sm:$0xff] %v1198_v11  ;;  %v1343_v14 = vadd.f32 %v1342_v12, %v1341_v9  ;;  %v1365_v15 = vadd.f32 %v1364_v13, %v1363_v10 }
 0x27d   :  { %v1201_v16 = vadd.f32 %v1365_v15, %v1343_v14 }
 0x27f   :  { %1205 = vst [vmem:[#allocation13 + $0x8] sm:$0xff] %v1201_v16 }
 0x280   :  { %1651 = shalt.err (!%p1648_p6)
}
 0x281   :  { %s1682_s10 = smov 128   ;;  %s1683_s11 = smov 8  }
 0x282   :  { %1217 = dma.vmem_to_hbm [thread:$0]  %s1212_s8, 256, %s1821_s7, [#allocation4], %s1682_s10, %s1682_s10, %s1683_s11  }
 0x283   :  { %1668 = dma.done.wait [#allocation4], 256  }
 0x284   :  { %1669 = vsyncadd [#allocation4], 4294967040 }
 0x285   :  { %1221 = vsyncpa [#allocation3], 1 }
 0x286   :  { %1222 = vsyncpa [#allocation6], 1 }
 0x287   :  { %1223 = vsyncpa [#allocation9], 1 }
 0x288   :  { %1224 = vsyncpa [#allocation12], 1 }
 0x289   :  { %1225 = vsyncpa [#allocation4], 1 }

</bundles_post_ra>
